<compile_context>
chip_gen: v5e
topology: v5e:2x2
jax: 0.10.0
libtpu: 0.0.40
codegen_flags: <defaults>
</compile_context>

<pallas_src>
import functools

import jax
import jax.numpy as jnp
from jax.experimental import pallas as pl
from jax.experimental.pallas import tpu as pltpu


def _round_up(x, m):
    return ((x + m - 1) // m) * m


def _default_vmem_limit():
    # Stay below physical VMEM (64 MiB on v7x, 128 MiB on v5e/v6e) with DMA headroom.
    try:
        cap = int(pltpu.get_tpu_info().vmem_capacity_bytes)
        return min(cap * 3 // 4, 100 * 1024 * 1024)
    except Exception:
        return 48 * 1024 * 1024


_VMEM_LIMIT = _default_vmem_limit()


def _cparams(dimension_semantics):
    return pltpu.CompilerParams(
        dimension_semantics=dimension_semantics,
        vmem_limit_bytes=_VMEM_LIMIT,
    )


# ----------------------------------------------------------------------------
# Pallas kernels
# ----------------------------------------------------------------------------
def matmul_bn_act_kernel(x_ref, w_ref, s_ref, b_ref, o_ref, *, act):
    """y = act((x @ w) * scale + bias); bf16 operands, f32 accumulate/epilogue."""
    y = jnp.dot(x_ref[...], w_ref[...], preferred_element_type=jnp.float32)
    y = y * s_ref[...] + b_ref[...]
    if act == "relu":
        y = jnp.maximum(y, 0.0)
    o_ref[...] = y.astype(o_ref.dtype)


def _shifted_rows(y, d):
    """t[p] = y[p + d] wherever 0 <= p + d < rows; out-of-range rows are zero.

    d is a static Python int; only static slices / concatenates are emitted."""
    rows, cols = y.shape
    if d == 0:
        return y
    if abs(d) >= rows:
        return jnp.zeros_like(y)
    z = jnp.zeros((abs(d), cols), y.dtype)
    if d > 0:
        return jnp.concatenate([y[d:, :], z], axis=0)
    return jnp.concatenate([z, y[: rows + d, :]], axis=0)


def seblock_kernel(x_ref, w1_ref, s1_ref, b1_ref,
                   w2_ref, s2_ref, b2_ref,
                   w3_ref, s3_ref, b3_ref,
                   wse1_ref, bse1_ref, wse2_ref, bse2_ref,
                   *rest, h, w, has_shortcut, emit_pool):
    """Fused SE-ResNet bottleneck block for one image (grid over the batch).

    x: (1, HW, Cin) bf16.  Weights are fully VMEM-resident bf16; BN folded into f32
    scale/bias.  conv2 (3x3, stride 1, pad 1) uses lane-concatenated shifted taps and one
    big-K matmul.  Optionally emits the global-average-pooled output for the classifier.
    """
    if has_shortcut:
        wsc_ref, ssc_ref, bsc_ref = rest[:3]
        rest = rest[3:]
    o_ref = rest[0]
    pool_ref = rest[1] if emit_pool else None

    hw = h * w
    x = x_ref[0]                                                    # (HW, Cin) bf16

    # conv1: 1x1 + BN + ReLU
    y1 = jnp.dot(x, w1_ref[...], preferred_element_type=jnp.float32)
    y1 = jnp.maximum(y1 * s1_ref[...] + b1_ref[...], 0.0).astype(jnp.bfloat16)

    # conv2: 3x3 stride-1 pad-1 + BN + ReLU.  Build the 9 taps as border-masked shifted
    # copies of the flattened activation and contract with (9*f1, f2) in one matmul.
    pos = jax.lax.broadcasted_iota(jnp.int32, (hw, 1), 0)
    row = pos // w
    col = pos % w
    taps = []
    for di in (-1, 0, 1):
        for dj in (-1, 0, 1):
            tap = _shifted_rows(y1, di * w + dj)
            valid = ((col + dj >= 0) & (col + dj <= w - 1) &
                     (row + di >= 0) & (row + di <= h - 1))         # (HW, 1) bool
            taps.append(jnp.where(valid, tap, jnp.zeros_like(tap)))
    taps = jnp.concatenate(taps, axis=1)                            # (HW, 9*f1) bf16
    y2 = jnp.dot(taps, w2_ref[...], preferred_element_type=jnp.float32)
    y2 = jnp.maximum(y2 * s2_ref[...] + b2_ref[...], 0.0).astype(jnp.bfloat16)

    # conv3: 1x1 + BN
    y3 = jnp.dot(y2, w3_ref[...], preferred_element_type=jnp.float32)
    y3 = y3 * s3_ref[...] + b3_ref[...]                             # (HW, f3) f32

    # SE gate: global-avg-pool -> FC -> ReLU -> FC -> sigmoid
    pooled = jnp.mean(y3, axis=0, keepdims=True)                    # (1, f3)
    z = jnp.dot(pooled.astype(jnp.bfloat16), wse1_ref[...],
                preferred_element_type=jnp.float32) + bse1_ref[...]
    z = jnp.maximum(z, 0.0)
    g = jnp.dot(z.astype(jnp.bfloat16), wse2_ref[...],
                preferred_element_type=jnp.float32) + bse2_ref[...]
    g = jax.nn.sigmoid(g)                                           # (1, f3)

    # shortcut (1x1 conv + BN) or identity, residual add, final ReLU
    if has_shortcut:
        sc = jnp.dot(x, wsc_ref[...], preferred_element_type=jnp.float32)
        sc = sc * ssc_ref[...] + bsc_ref[...]
    else:
        sc = x.astype(jnp.float32)                                  # Cin == f3
    out = jnp.maximum(y3 * g + sc, 0.0)                             # (HW, f3) f32
    o_ref[0] = out.astype(o_ref.dtype)

    if emit_pool:
        # fused global average pool feeding the classifier head
        pool_ref[0] = jnp.mean(out, axis=0, keepdims=True)


def fc_kernel(x_ref, w_ref, b_ref, o_ref):
    o_ref[...] = (jnp.dot(x_ref[...], w_ref[...], preferred_element_type=jnp.float32)
                  + b_ref[...])


# ----------------------------------------------------------------------------
# Pallas wrappers
# ----------------------------------------------------------------------------
def matmul_bn_act(x2d, w2d, scale, bias, act="relu"):
    """Stem 7x7 conv (as im2col matmul) + BN + ReLU.  Lane-dense (128-padded) output."""
    m, k = x2d.shape
    cout = w2d.shape[1]
    tm = 256 if m % 256 == 0 else m
    tn = cout
    cost = pl.CostEstimate(
        flops=2 * m * k * cout,
        transcendentals=0,
        bytes_accessed=2 * (m * k + k * cout + m * cout),
    )
    return pl.pallas_call(
        functools.partial(matmul_bn_act_kernel, act=act),
        out_shape=jax.ShapeDtypeStruct((m, cout), jnp.bfloat16),
        grid=(m // tm, cout // tn),
        in_specs=[
            pl.BlockSpec((tm, k), lambda i, j: (i, 0)),
            pl.BlockSpec((k, tn), lambda i, j: (0, j)),
            pl.BlockSpec((1, tn), lambda i, j: (0, j)),
            pl.BlockSpec((1, tn), lambda i, j: (0, j)),
        ],
        out_specs=pl.BlockSpec((tm, tn), lambda i, j: (i, j)),
        compiler_params=_cparams(("parallel", "parallel")),
        cost_estimate=cost,
    )(x2d, w2d, scale, bias)


def seblock(xs3, p, h, w, emit_pool=False):
    """Fused bottleneck block.  xs3: (N, HW, Cin) bf16 (already strided)."""
    n, hw, cin = xs3.shape
    f1 = p["conv1_w"].shape[1]
    f2 = p["conv2_w"].shape[1]
    f3 = p["conv3_w"].shape[1]
    r = p["se_w1"].shape[1]
    has_sc = p["is_1x1conv"]

    def full(shape):
        nd = len(shape)
        return pl.BlockSpec(shape, lambda b, _nd=nd: (0,) * _nd)

    args = [
        xs3,
        p["conv1_w"], p["bn1"][0], p["bn1"][1],
        p["conv2_w"], p["bn2"][0], p["bn2"][1],
        p["conv3_w"], p["bn3"][0], p["bn3"][1],
        p["se_w1"], p["se_b1"],
        p["se_w2"], p["se_b2"],
    ]
    in_specs = [pl.BlockSpec((1, hw, cin), lambda b: (b, 0, 0))]
    in_specs += [full(a.shape) for a in args[1:]]
    if has_sc:
        args += [p["sc_w"], p["sc_bn"][0], p["sc_bn"][1]]
        in_specs += [full(a.shape) for a in args[-3:]]

    out_shape = [jax.ShapeDtypeStruct((n, hw, f3), jnp.bfloat16)]
    out_specs = [pl.BlockSpec((1, hw, f3), lambda b: (b, 0, 0))]
    if emit_pool:
        out_shape.append(jax.ShapeDtypeStruct((n, 1, f3), jnp.float32))
        out_specs.append(pl.BlockSpec((1, 1, f3), lambda b: (b, 0, 0)))

    flops = 2 * n * hw * (cin * f1 + 9 * f1 * f2 + f2 * f3
                          + (cin * f3 if has_sc else 0)) + 4 * n * f3 * r
    wbytes = sum(int(a.size) * a.dtype.itemsize for a in args[1:])
    cost = pl.CostEstimate(
        flops=flops,
        transcendentals=n * f3,
        bytes_accessed=2 * n * hw * (cin + f3) + wbytes,
    )
    return pl.pallas_call(
        functools.partial(seblock_kernel, h=h, w=w,
                          has_shortcut=has_sc, emit_pool=emit_pool),
        out_shape=tuple(out_shape) if emit_pool else out_shape[0],
        grid=(n,),
        in_specs=in_specs,
        out_specs=tuple(out_specs) if emit_pool else out_specs[0],
        compiler_params=_cparams(("parallel",)),
        cost_estimate=cost,
    )(*args)


def fc_head(pooled, w_pad, b_pad, num_classes):
    """(N, 2048) @ (2048, 128-padded) + bias; sliced to `num_classes` outside."""
    n, c = pooled.shape
    pcls = w_pad.shape[1]
    logits = pl.pallas_call(
        fc_kernel,
        out_shape=jax.ShapeDtypeStruct((n, pcls), jnp.float32),
        grid=(1,),
        in_specs=[
            pl.BlockSpec((n, c), lambda i: (0, 0)),
            pl.BlockSpec((c, pcls), lambda i: (0, 0)),
            pl.BlockSpec((1, pcls), lambda i: (0, 0)),
        ],
        out_specs=pl.BlockSpec((n, pcls), lambda i: (0, 0)),
        compiler_params=_cparams(("arbitrary",)),
    )(pooled.astype(jnp.bfloat16), w_pad, b_pad)
    return logits[:, :num_classes]


def maxpool_3x3_s2_p1(x):
    # Plain-JAX glue (memory-bound; stacking 9 taps through HBM would be strictly worse).
    n, h, w, c = x.shape
    xp = jnp.pad(x, ((0, 0), (1, 1), (1, 1), (0, 0)), constant_values=-jnp.inf)
    ho = (h + 2 - 3) // 2 + 1
    wo = (w + 2 - 3) // 2 + 1
    out = None
    for i in range(3):
        for j in range(3):
            v = xp[:, i:i + 2 * ho:2, j:j + 2 * wo:2, :]
            out = v if out is None else jnp.maximum(out, v)
    return out


# ----------------------------------------------------------------------------
# Parameter initialization (deterministic, synthetic; eval-mode folded BN).
# Channel dims of 64 (stem, stage-1 f1/f2) and the SE bottleneck r are zero-padded to 128
# so every kernel output is lane-dense; padded weights/scales/biases are zero, so results
# are identical to the unpadded network.
# ----------------------------------------------------------------------------
def init_bn(key, c, cp=None):
    cp = c if cp is None else cp
    k1, k2, k3, k4 = jax.random.split(key, 4)
    gamma = 1.0 + 0.1 * jax.random.normal(k1, (c,), jnp.float32)
    beta = 0.1 * jax.random.normal(k2, (c,), jnp.float32)
    mean = 0.1 * jax.random.normal(k3, (c,), jnp.float32)
    var = jnp.abs(jax.random.normal(k4, (c,), jnp.float32)) + 0.5
    scale = gamma / jnp.sqrt(var + 1e-5)
    bias = beta - mean * scale
    scale = jnp.pad(scale, (0, cp - c)).reshape(1, cp)
    bias = jnp.pad(bias, (0, cp - c)).reshape(1, cp)
    return scale, bias


def init_block(key, cin_real, cin_pad, filters, stride, is_1x1conv):
    f1, f2, f3 = filters
    f1p, f2p = _round_up(f1, 128), _round_up(f2, 128)
    r = f3 // 16
    rp = _round_up(r, 128)
    ks = jax.random.split(key, 12)
    bf = jnp.bfloat16

    def pad2(a, rows, cols):
        return jnp.pad(a, ((0, rows - a.shape[0]), (0, cols - a.shape[1])))

    conv1 = 0.05 * jax.random.normal(ks[0], (cin_real, f1), jnp.float32)
    conv2 = 0.05 * jax.random.normal(ks[2], (3, 3, f1, f2), jnp.float32)
    conv2 = jnp.pad(conv2, ((0, 0), (0, 0), (0, f1p - f1), (0, f2p - f2)))
    conv3 = 0.05 * jax.random.normal(ks[4], (f2, f3), jnp.float32)
    se_w1 = 0.05 * jax.random.normal(ks[8], (f3, r), jnp.float32)
    se_b1 = 0.01 * jax.random.normal(ks[9], (r,), jnp.float32)
    se_w2 = 0.05 * jax.random.normal(ks[10], (r, f3), jnp.float32)
    se_b2 = 0.01 * jax.random.normal(ks[11], (f3,), jnp.float32)

    p = {
        "stride": stride,
        "is_1x1conv": is_1x1conv,
        "conv1_w": pad2(conv1, cin_pad, f1p).astype(bf),
        "bn1": init_bn(ks[1], f1, f1p),
        # (3,3,f1p,f2p) -> (9*f1p, f2p); row order (ki, kj, cin) matches the in-kernel
        # tap order (di, dj) over (-1,0,1)x(-1,0,1).
        "conv2_w": conv2.reshape(9 * f1p, f2p).astype(bf),
        "bn2": init_bn(ks[3], f2, f2p),
        "conv3_w": pad2(conv3, f2p, f3).astype(bf),
        "bn3": init_bn(ks[5], f3),
        "se_w1": jnp.pad(se_w1, ((0, 0), (0, rp - r))).astype(bf),
        "se_b1": jnp.pad(se_b1, (0, rp - r)).reshape(1, rp),
        "se_w2": jnp.pad(se_w2, ((0, rp - r), (0, 0))).astype(bf),
        "se_b2": se_b2.reshape(1, f3),
    }
    if is_1x1conv:
        sc = 0.05 * jax.random.normal(ks[6], (cin_real, f3), jnp.float32)
        p["sc_w"] = pad2(sc, cin_pad, f3).astype(bf)
        p["sc_bn"] = init_bn(ks[7], f3)
    return p


def init_seresnet(key, cfg):
    classes = cfg["classes"]
    num = cfg["num"]
    keys = jax.random.split(key, 6)
    bf = jnp.bfloat16
    pcls = _round_up(classes, 128)

    stem = 0.05 * jax.random.normal(keys[0], (7, 7, 3, 64), jnp.float32)
    stem = jnp.pad(stem.reshape(7 * 7 * 3, 64), ((0, 0), (0, 64)))   # lane-dense 128 Cout
    fc_w = 0.05 * jax.random.normal(keys[3], (2048, classes), jnp.float32)
    fc_b = 0.01 * jax.random.normal(keys[4], (classes,), jnp.float32)

    params = {
        "stem_w": stem.astype(bf),
        "stem_bn": init_bn(keys[1], 64, 128),
        "fc_w_pad": jnp.pad(fc_w, ((0, 0), (0, pcls - classes))).astype(bf),
        "fc_b_pad": jnp.pad(fc_b, (0, pcls - classes)).reshape(1, pcls),
    }
    stage_filters = [(64, 64, 256), (128, 128, 512), (256, 256, 1024), (512, 512, 2048)]
    strides = [1, 2, 2, 2]
    block_keys = jax.random.split(keys[2], sum(num))
    stages, idx = [], 0
    in_real, in_pad = 64, 128
    for filters, stride, nb in zip(stage_filters, strides, num):
        blocks = [init_block(block_keys[idx], in_real, in_pad, filters, stride, True)]
        idx += 1
        for _ in range(1, nb):
            blocks.append(init_block(block_keys[idx], filters[2], filters[2],
                                     filters, 1, False))
            idx += 1
        in_real = in_pad = filters[2]
        stages.append(blocks)
    params["stages"] = stages
    return params


# ----------------------------------------------------------------------------
# Forward pass
# ----------------------------------------------------------------------------
def stem_forward(params, x):
    # 7x7 stride-2 pad-3 conv via small im2col (Cin=3 -> K=147; a few hundred KB).
    n, h, w, _ = x.shape
    xp = jnp.pad(x, ((0, 0), (3, 3), (3, 3), (0, 0)))
    ho = (h + 6 - 7) // 2 + 1
    wo = (w + 6 - 7) // 2 + 1
    cols = [xp[:, i:i + 2 * ho:2, j:j + 2 * wo:2, :] for i in range(7) for j in range(7)]
    patches = jnp.stack(cols, axis=3)                         # (N, ho, wo, 49, 3) bf16
    x2d = patches.reshape(n * ho * wo, 49 * 3)
    y = matmul_bn_act(x2d, params["stem_w"], *params["stem_bn"], act="relu")
    return y.reshape(n, ho, wo, -1)


def block_forward(p, x, emit_pool=False):
    n, h, w, cin = x.shape
    s = p["stride"]
    # PyTorch reference puts the stride on conv1 (1x1) and the 1x1 shortcut, so
    # subsampling before the fused block is exactly equivalent.
    xs = x[:, ::s, ::s, :] if s > 1 else x
    ho, wo = xs.shape[1], xs.shape[2]
    xs3 = xs.reshape(n, ho * wo, cin)
    out = seblock(xs3, p, ho, wo, emit_pool=emit_pool)
    if emit_pool:
        y, pooled = out
        return y.reshape(n, ho, wo, y.shape[-1]), pooled.reshape(n, -1)
    return out.reshape(n, ho, wo, out.shape[-1]), None


def seresnet_forward(params, x_nchw, num_classes):
    # NCHW -> NHWC, bf16 activations everywhere (f32 accumulation inside kernels).
    x = jnp.transpose(x_nchw, (0, 2, 3, 1)).astype(jnp.bfloat16)
    x = stem_forward(params, x)
    x = maxpool_3x3_s2_p1(x)
    blocks = [b for stage in params["stages"] for b in stage]
    pooled = None
    for i, p in enumerate(blocks):
        x, pooled = block_forward(p, x, emit_pool=(i == len(blocks) - 1))
    return fc_head(pooled, params["fc_w_pad"], params["fc_b_pad"], num_classes)


# ----------------------------------------------------------------------------
if __name__ == "__main__":
    cfg = {"classes": 10, "num": [1, 1, 1, 1]}  # small per-stage depth to keep it quick
    key = jax.random.PRNGKey(0)
    pkey, xkey = jax.random.split(key)
    params = init_seresnet(pkey, cfg)

    # CIFAR-10-shaped input, small batch: (N, C, H, W) = (2, 3, 32, 32)
    x = jax.random.normal(xkey, (2, 3, 32, 32), jnp.float32)

    out = seresnet_forward(params, x, cfg["classes"])
    out = jax.block_until_ready(out)
    assert out.shape == (2, cfg["classes"])
    assert bool(jnp.all(jnp.isfinite(out)))
    print("KERNEL_OK")
</pallas_src>

<mosaic_0001>
module attributes {stable_mosaic.version = 11 : i64} {
  func.func @matmul_bn_act_kernel(%arg0: i32, %arg1: i32, %arg2: memref<256x147xbf16, #tpu.memory_space<vmem>>, %arg3: memref<147x128xbf16, #tpu.memory_space<vmem>>, %arg4: memref<1x128xf32, #tpu.memory_space<vmem>>, %arg5: memref<1x128xf32, #tpu.memory_space<vmem>>, %arg6: memref<256x128xbf16, #tpu.memory_space<vmem>>) attributes {dimension_semantics = [#tpu.dimension_semantics<parallel>, #tpu.dimension_semantics<parallel>], iteration_bounds = array<i64: 2, 1>, scalar_prefetch = 0 : i64, scratch_operands = 0 : i64, tpu.core_type = #tpu.core_type<tc>, window_params = [{transform_indices = @transform_0, window_bounds = array<i64: 256, 147>}, {transform_indices = @transform_1, window_bounds = array<i64: 147, 128>}, {transform_indices = @transform_2, window_bounds = array<i64: 1, 128>}, {transform_indices = @transform_3, window_bounds = array<i64: 1, 128>}, {transform_indices = @transform_4, window_bounds = array<i64: 256, 128>}]} {
    %c0 = arith.constant 0 : index
    %c0_0 = arith.constant 0 : index
    %0 = vector.load %arg2[%c0, %c0_0] : memref<256x147xbf16, #tpu.memory_space<vmem>>, vector<256x147xbf16>
    %c0_1 = arith.constant 0 : index
    %c0_2 = arith.constant 0 : index
    %1 = vector.load %arg3[%c0_1, %c0_2] : memref<147x128xbf16, #tpu.memory_space<vmem>>, vector<147x128xbf16>
    %cst = arith.constant dense<0.000000e+00> : vector<256x128xf32>
    %2 = tpu.matmul %0, %1, %cst {dimension_numbers = #tpu.dot_dimension_numbers<[1], [0], [0], [1], [0, 0, 1, 1], [], []>} : vector<256x147xbf16>, vector<147x128xbf16>, vector<256x128xf32> -> vector<256x128xf32>
    %c0_3 = arith.constant 0 : index
    %c0_4 = arith.constant 0 : index
    %3 = vector.load %arg4[%c0_3, %c0_4] : memref<1x128xf32, #tpu.memory_space<vmem>>, vector<1x128xf32>
    %4 = vector.broadcast %3 : vector<1x128xf32> to vector<256x128xf32>
    %5 = arith.mulf %2, %4 : vector<256x128xf32>
    %c0_5 = arith.constant 0 : index
    %c0_6 = arith.constant 0 : index
    %6 = vector.load %arg5[%c0_5, %c0_6] : memref<1x128xf32, #tpu.memory_space<vmem>>, vector<1x128xf32>
    %7 = vector.broadcast %6 : vector<1x128xf32> to vector<256x128xf32>
    %8 = arith.addf %5, %7 : vector<256x128xf32>
    %cst_7 = arith.constant 0.000000e+00 : f32
    %9 = vector.broadcast %cst_7 : f32 to vector<256x128xf32>
    %10 = arith.maximumf %8, %9 : vector<256x128xf32>
    %11 = arith.truncf %10 : vector<256x128xf32> to vector<256x128xbf16>
    %c0_8 = arith.constant 0 : index
    %c0_9 = arith.constant 0 : index
    %12 = vector.load %arg6[%c0_8, %c0_9] : memref<256x128xbf16, #tpu.memory_space<vmem>>, vector<256x128xbf16>
    tpu.vector_store %arg6[%c0_8, %c0_9], %11 {strides = array<i32>} : memref<256x128xbf16, #tpu.memory_space<vmem>>, vector<256x128xbf16>,
    return
  }
  func.func @transform_0(%arg0: i32, %arg1: i32) -> (i32, i32) {
    %c0_i32 = arith.constant 0 : i32
    %c0_i32_0 = arith.constant 0 : i32
    return %arg0, %c0_i32 : i32, i32
  }
  func.func @transform_1(%arg0: i32, %arg1: i32) -> (i32, i32) {
    %c0_i32 = arith.constant 0 : i32
    %c0_i32_0 = arith.constant 0 : i32
    return %c0_i32, %arg1 : i32, i32
  }
  func.func @transform_2(%arg0: i32, %arg1: i32) -> (i32, i32) {
    %c0_i32 = arith.constant 0 : i32
    %c0_i32_0 = arith.constant 0 : i32
    return %c0_i32, %arg1 : i32, i32
  }
  func.func @transform_3(%arg0: i32, %arg1: i32) -> (i32, i32) {
    %c0_i32 = arith.constant 0 : i32
    %c0_i32_0 = arith.constant 0 : i32
    return %c0_i32, %arg1 : i32, i32
  }
  func.func @transform_4(%arg0: i32, %arg1: i32) -> (i32, i32) {
    %c0_i32 = arith.constant 0 : i32
    return %arg0, %arg1 : i32, i32
  }
}

</mosaic_0001>

<bundles_post_ra>
// kernel: tpu_custom_call.1
= control target key start
LH: loop header
LB: loop body
LE: loop exit
PB: predicated region body
PF: predicated region fallthrough
CT: control target
= control target key end

     0   :  { %9 = vsyncpa [#allocation3], 0  ;;  %s1868_s0 = inlined_call_operand.vmem [shape: bf16[512,147], index: 0, kind: input, shape index: {}]   ;;  %s1869_s1 = inlined_call_operand.vmem [shape: bf16[147,128], index: 1, kind: input, shape index: {}]   ;;  %s1870_s2 = inlined_call_operand.vmem [shape: f32[1,128], index: 2, kind: input, shape index: {}]   ;;  %s1871_s3 = inlined_call_operand.vmem [shape: f32[1,128], index: 3, kind: input, shape index: {}]   ;;  %s1872_s4 = inlined_call_operand.hbm [shape: bf16[512,128], index: 4, kind: output, shape index: {}]  }
   0x1   :  { %11 = vsyncpa [#allocation3 + $0x1], 0  ;;  %s1557_s15 = smov 0   ;;  %s1559_s16 = smov 0  }
   0x2   :  { %s1561_s17 = smov 0   ;;  %s1563_s18 = smov 0  }
   0x3   :  { %s1565_s19 = smov 0   ;;  %s1567_s20 = smov 0  }
   0x4 LB: > { %s1044_s21 = sadd.s32 4294967295, %s1527_s20   ;;  %s1045_s22 = sadd.s32 4294967294, %s1527_s20   ;;  %s1527_s20 = sphi %s1567_s20, %s17_s20   ;;  %s1523_s19 = sphi %s1565_s19, %s1879_s19   ;;  %s1519_s18 = sphi %s1563_s18, %s1878_s18   ;;  %s1515_s17 = sphi %s1561_s17, %s1877_s17   ;;  %s1511_s16 = sphi %s1559_s16, %s1876_s16   ;;  %s1507_s15 = sphi %s1557_s15, %s1875_s15  }
   0x5   : > { %s29_s23 = sadd.s32 1, %s1523_s19  ;;  %s142_s24 = sadd.s32 1, %s1515_s17 }
   0x6   : > { %p31_p0 = scmp.ge.s32.totalorder %s29_s23, 2  ;;  %p152_p1 = scmp.ne.s32.totalorder %s1515_s17, %s1511_s16 }
   0x7   : > { %p153_p2 = scmp.eq.s32.totalorder %s1044_s21, 1  ;;  %p158_p3 = scmp.ne.s32.totalorder %s1511_s16, %s1507_s15 }
   0x8   : > { %s1881_s23 = smov (%p31_p0, %s29_s23), 0  ;;  %p159_p5 = scmp.eq.s32.totalorder %s1045_s22, 1 }
   0x9   : > { %p1597_p4 = por %p153_p2, %p152_p1  ;;  %s137_s26 = ssub.s32 %s1523_s19, %s1881_s23 }
   0xa   : > { %p1051_p6 = scmp.ge.s32.totalorder %s1527_s20, 1  ;;  %p140_p7 = scmp.eq.s32.totalorder %s137_s26, 0 }
   0xb   : > { %p1604_p8 = por %p159_p5, %p158_p3  ;;  %p206_p9 = scmp.lt.s32.totalorder %s1527_s20, 3 }
   0xc   : > { %s1610_s28 = scalar_select %p140_p7, %s1515_s17, %s142_s24  }
   0xd   : > { %p207_p10 = pnand %p1051_p6, %p206_p9 }
   0xe   : > { %s1053_s7 = sshll.u32 (!%p207_p10), %s1519_s18, 5  ;;  %s240_s22 = sand.u32 (!%p207_p10), 1, %s1511_s16  }
   0xf   : > { %210 = sbr.rel (%p207_p10) target bundleno = 318 (0x13e), region = 36  ;;  %p244_p11 = scmp.lt.s32.totalorder (!%p207_p10), %s1053_s7, 63 }
  0x10   : > { %s1283_s29 = sshll.u32 (!%p207_p10), %s1519_s18, 7  ;;  %s917_s8 = scalar_lea.sflag (!%p207_p10), [#allocation3], %s240_s22 }
  0x11   : > { %s929_s6 = scalar_lea.hbm (!%p207_p10), %s1872_s4, %s1283_s29  ;;  %s1469_s13 = scalar_lea.hbm (!%p207_p10), %s1872_s4, 256 }
  0x14   : > { %v1281_v0 = vld [vmem:[%s1869_s1 + $0x38] sm:$0xff]  ;;  %v312_v1 = vld [vmem:[%s1869_s1 + $0x48] sm:$0x3]  ;;  %vm563_vm0 = vcmask 1040384   ;;  %vm564_vm1 = vcmask 1041408   ;;  %v1280_v3 = vld [vmem:[%s1869_s1 + $0x30] sm:$0xff] }
  0x15   : > { %v494_v2 = vunpack.c.l.b16 %v312_v1  ;;  %570 = vmatpush.bf16.msra.mxu0 %v1281_v0  ;;  %1379 = vmatpush.bf16.msra.mxu2 %v1281_v0  ;;  %v1529_v4 = vmov 65535   ;;  %s1883_s7 = smov (!%p244_p11, %s1053_s7), 63  ;;  %v1279_v9 = vld [vmem:[%s1869_s1 + $0x28] sm:$0xff]  ;;  %v1282_v10 = vld [vmem:[%s1869_s1 + $0x40] sm:$0xff]  ;;  %vm514_vm2 = vcmask 154624   ;;  %v1277_v18 = vld [vmem:[%s1869_s1 + $0x18] sm:$0xff] }
  0x16   : > { %v565_v5 = vsel %vm563_vm0, 4294967295, %v1529_v4  ;;  %s1241_s12 = sshll.u32 %s1883_s7, 3  ;;  %v1278_v14 = vld [vmem:[%s1869_s1 + $0x20] sm:$0xff]  ;;  %v1276_v19 = vld [vmem:[%s1869_s1 + $0x10] sm:$0xff]  ;;  %v1275_v20 = vld [vmem:[%s1869_s1 + $0x8] sm:$0xff]  ;;  %s932_s7 = sshll.u32 %s929_s6, 4  ;;  %s933_s7 = int_to_ptr.hbm [resolvable:$true] %s932_s7 }
  0x17   : > { %v504_v6 = vpack.c.b16 %v494_v2, %v494_v2  ;;  %v566_v7 = vsel %vm564_vm1, %v565_v5, 0  ;;  %s1631_s24 = scalar_lea.vmem %s1868_s0, %s1241_s12  ;;  %v1274_v26 = vld [vmem:[%s1869_s1] sm:$0xff]  ;;  %s1463_s9 = sshra.s32 %s933_s7, 4  ;;  %s1464_s9 = int_to_ptr.hbm [resolvable:$true] %s1463_s9 }
  0x18   : > { %v1242_v11 = vld [vmem:[%s1631_s24 + $0x4] sm:$0xf]  ;;  %v1060_v12 = vld [vmem:[%s1631_s24 + $0x8] sm:$0xf0]  ;;  %v1260_v15 = vld [vmem:[%s1631_s24 + $0x94] sm:$0xf]  ;;  %p1470_p1 = scmp.lt.s32.totalorder %s1464_s9, %s1872_s4 }
  0x19   : > { %v568_v8 = vand.u32 %v566_v7, %v504_v6  ;;  %571 = vmatpush.bf16.msra.mxu0 %v1280_v3  ;;  %1380 = vmatpush.bf16.msra.mxu2 %v1280_v3  ;;  %v1063_v13 = vor.u32 %v1242_v11, %v1060_v12  ;;  %v1132_v16 = vld [vmem:[%s1631_s24 + $0x98] sm:$0xf0]  ;;  %v1244_v21 = vld [vmem:[%s1631_s24 + $0x14] sm:$0xf]  ;;  %v1262_v23 = vld [vmem:[%s1631_s24 + $0xa4] sm:$0xf] }
  0x1a   : > { %v1135_v17 = vor.u32 %v1260_v15, %v1132_v16  ;;  %v1068_v22 = vld [vmem:[%s1631_s24 + $0x18] sm:$0xf0]  ;;  %v1140_v24 = vld [vmem:[%s1631_s24 + $0xa8] sm:$0xf0]  ;;  %v1058_v27 = vld [vmem:[%s1631_s24] sm:$0xf] }
  0x1b   : > { %665 = vmatpush.bf16.msra.mxu1 %v568_v8  ;;  %1387 = vmatpush.bf16.msra.mxu3 %v568_v8  ;;  %v1071_v25 = vor.u32 %v1244_v21, %v1068_v22  ;;  %v1243_v28 = vld [vmem:[%s1631_s24 + $0x4] sm:$0xf0]  ;;  %v1122_v29 = vld [vmem:[%s1631_s24 + $0x80] sm:$0xf]  ;;  %v1143_v31 = vor.u32 %v1262_v23, %v1140_v24  ;;  %v1246_v34 = vld [vmem:[%s1631_s24 + $0x24] sm:$0xf] }
  0x1c   : > { %v1259_v30 = vld [vmem:[%s1631_s24 + $0x84] sm:$0xf0]  ;;  %v1059_v32 = vor.u32 %v1243_v28, %v1058_v27  ;;  %v1076_v35 = vld [vmem:[%s1631_s24 + $0x28] sm:$0xf0]  ;;  %v1264_v36 = vld [vmem:[%s1631_s24 + $0xb4] sm:$0xf] }
  0x1d   : > { %572 = vmatpush.bf16.msra.mxu0 %v1279_v9  ;;  %1381 = vmatpush.bf16.msra.mxu2 %v1279_v9  ;;  %v1123_v33 = vor.u32 %v1259_v30, %v1122_v29  ;;  %v1148_v37 = vld [vmem:[%s1631_s24 + $0xb8] sm:$0xf0]  ;;  %v1079_v38 = vor.u32 %v1246_v34, %v1076_v35  ;;  %v1066_v39 = vld [vmem:[%s1631_s24 + $0x10] sm:$0xf]  ;;  %v1245_v40 = vld [vmem:[%s1631_s24 + $0x14] sm:$0xf0] }
  0x1e   : > { %v1130_v41 = vld [vmem:[%s1631_s24 + $0x90] sm:$0xf]  ;;  %v1261_v42 = vld [vmem:[%s1631_s24 + $0x94] sm:$0xf0]  ;;  %v1151_v43 = vor.u32 %v1264_v36, %v1148_v37  ;;  %v1067_v44 = vor.u32 %v1245_v40, %v1066_v39  ;;  %v1248_v46 = vld [vmem:[%s1631_s24 + $0x34] sm:$0xf] }
  0x1f   : > { %666 = vmatpush.bf16.msra.mxu1 %v1282_v10  ;;  %1388 = vmatpush.bf16.msra.mxu3 %v1282_v10  ;;  %v1131_v45 = vor.u32 %v1261_v42, %v1130_v41  ;;  %v1084_v47 = vld [vmem:[%s1631_s24 + $0x38] sm:$0xf0]  ;;  %v1266_v48 = vld [vmem:[%s1631_s24 + $0xc4] sm:$0xf]  ;;  %v1156_v49 = vld [vmem:[%s1631_s24 + $0xc8] sm:$0xf0] }
  0x20   : > { %v1087_v50 = vor.u32 %v1248_v46, %v1084_v47  ;;  %v1074_v51 = vld [vmem:[%s1631_s24 + $0x20] sm:$0xf]  ;;  %v1247_v52 = vld [vmem:[%s1631_s24 + $0x24] sm:$0xf0]  ;;  %v1159_v55 = vor.u32 %v1266_v48, %v1156_v49  ;;  %v1250_v58 = vld [vmem:[%s1631_s24 + $0x44] sm:$0xf] }
  0x21   : > { %573 = vmatpush.bf16.msra.mxu0 %v1278_v14  ;;  %1382 = vmatpush.bf16.msra.mxu2 %v1278_v14  ;;  %v1138_v53 = vld [vmem:[%s1631_s24 + $0xa0] sm:$0xf]  ;;  %v1263_v54 = vld [vmem:[%s1631_s24 + $0xa4] sm:$0xf0]  ;;  %v1075_v56 = vor.u32 %v1247_v52, %v1074_v51  ;;  %v1092_v59 = vld [vmem:[%s1631_s24 + $0x48] sm:$0xf0] }
  0x22   : > { %1220 = vmatmul.msk.bf16.vlgmr.msra.gmra.mxu1 %vm514_vm2, %v1063_v13  ;;  %1229 = vmatmul.msk.bf16.vlgmr.msra.gmra.mxu3 %vm514_vm2, %v1135_v17  ;;  %v1139_v57 = vor.u32 %v1263_v54, %v1138_v53  ;;  %v1268_v60 = vld [vmem:[%s1631_s24 + $0xd4] sm:$0xf]  ;;  %v1164_v61 = vld [vmem:[%s1631_s24 + $0xd8] sm:$0xf0]  ;;  %v1095_v62 = vor.u32 %v1250_v58, %v1092_v59  ;;  %v1082_v63 = vld [vmem:[%s1631_s24 + $0x30] sm:$0xf] }
  0x23   : > { %v1249_v0 = vld [vmem:[%s1631_s24 + $0x34] sm:$0xf0]  ;;  %v1146_v1 = vld [vmem:[%s1631_s24 + $0xb0] sm:$0xf]  ;;  %v1167_v3 = vor.u32 %v1268_v60, %v1164_v61  ;;  %v1252_v6 = vld [vmem:[%s1631_s24 + $0x54] sm:$0xf] }
  0x24   : > { %v1265_v2 = vld [vmem:[%s1631_s24 + $0xb4] sm:$0xf0]  ;;  %v1083_v4 = vor.u32 %v1249_v0, %v1082_v63  ;;  %v1100_v7 = vld [vmem:[%s1631_s24 + $0x58] sm:$0xf0]  ;;  %v1270_v8 = vld [vmem:[%s1631_s24 + $0xe4] sm:$0xf] }
  0x25   : > { %574 = vmatpush.bf16.msra.mxu0 %v1277_v18  ;;  %1383 = vmatpush.bf16.msra.mxu2 %v1277_v18  ;;  %v1147_v5 = vor.u32 %v1265_v2, %v1146_v1  ;;  %v1172_v9 = vld [vmem:[%s1631_s24 + $0xe8] sm:$0xf0]  ;;  %v1103_v10 = vor.u32 %v1252_v6, %v1100_v7  ;;  %v1090_v11 = vld [vmem:[%s1631_s24 + $0x40] sm:$0xf]  ;;  %v1251_v12 = vld [vmem:[%s1631_s24 + $0x44] sm:$0xf0] }
  0x26   : > { %v1154_v13 = vld [vmem:[%s1631_s24 + $0xc0] sm:$0xf]  ;;  %v1267_v14 = vld [vmem:[%s1631_s24 + $0xc4] sm:$0xf0]  ;;  %v1175_v15 = vor.u32 %v1270_v8, %v1172_v9  ;;  %v1091_v16 = vor.u32 %v1251_v12, %v1090_v11  ;;  %v1254_v18 = vld [vmem:[%s1631_s24 + $0x64] sm:$0xf] }
  0x27   : > { %v1155_v17 = vor.u32 %v1267_v14, %v1154_v13  ;;  %v1180_v21 = vld [vmem:[%s1631_s24 + $0xf8] sm:$0xf0]  ;;  %v1098_v23 = vld [vmem:[%s1631_s24 + $0x50] sm:$0xf]  ;;  %v1253_v24 = vld [vmem:[%s1631_s24 + $0x54] sm:$0xf0] }
  0x28   : > { %v1099_v28 = vor.u32 %v1253_v24, %v1098_v23  ;;  %v1256_v30 = vld [vmem:[%s1631_s24 + $0x74] sm:$0xf]  ;;  %v1255_v34 = vld [vmem:[%s1631_s24 + $0x64] sm:$0xf0]  ;;  %v1170_v35 = vld [vmem:[%s1631_s24 + $0xe0] sm:$0xf] }
  0x29   : > { %575 = vmatpush.bf16.msra.mxu0 %v1276_v19  ;;  %1384 = vmatpush.bf16.msra.mxu2 %v1276_v19  ;;  %v1108_v19 = vld [vmem:[%s1631_s24 + $0x68] sm:$0xf0]  ;;  %v1271_v36 = vld [vmem:[%s1631_s24 + $0xe4] sm:$0xf0]  ;;  %v1258_v39 = vld [vmem:[%s1631_s24 + $0x84] sm:$0xf] }
  0x2a   : > { %v1111_v22 = vor.u32 %v1254_v18, %v1108_v19  ;;  %v1124_v40 = vld [vmem:[%s1631_s24 + $0x88] sm:$0xf0]  ;;  %v1114_v42 = vld [vmem:[%s1631_s24 + $0x70] sm:$0xf]  ;;  %v1273_v46 = vld [vmem:[%s1631_s24 + $0xf4] sm:$0xf0] }
  0x2b   : > { %v1127_v41 = vor.u32 %v1258_v39, %v1124_v40  ;;  %v1731_v54 = vld [vmem:[%s1870_s2] ss:$0 sm:$0xff]  ;;  %s1465_s10 = scalar_lea.hbm %s1464_s9, 128 }
  0x2c   : > { %p1466_p12 = scmp.ne.s32.totalorder %s1464_s9, %s1465_s10  ;;  %p1471_p2 = scmp.lt.s32.totalorder %s1469_s13, %s1465_s10 }
  0x2d   : > { %576 = vmatpush.bf16.msra.mxu0 %v1275_v20  ;;  %1385 = vmatpush.bf16.msra.mxu2 %v1275_v20  ;;  %v1272_v20 = vld [vmem:[%s1631_s24 + $0xf4] sm:$0xf] }
  0x2e   : > { %v1183_v27 = vor.u32 %v1272_v20, %v1180_v21  ;;  %p1467_p13 = pnand %p1466_p12, %p1597_p4  ;;  %p1472_p3 = por %p1471_p2, %p1470_p1 }
  0x30   : > { %p1468_p0 = pneg %p1467_p13 }
  0x31   : > { %577 = vmatpush.bf16.msra.mxu0 %v1274_v26  ;;  %1386 = vmatpush.bf16.msra.mxu2 %v1274_v26  ;;  %v1269_v26 = vld [vmem:[%s1631_s24 + $0xd4] sm:$0xf0] }
  0x32   : > { %1221 = vmatmul.msk.bf16.gmra.mxu1 %vm514_vm2, %v1071_v25  ;;  %1230 = vmatmul.msk.bf16.gmra.mxu3 %vm514_vm2, %v1143_v31  ;;  %v1162_v25 = vld [vmem:[%s1631_s24 + $0xd0] sm:$0xf]  ;;  %v1116_v31 = vld [vmem:[%s1631_s24 + $0x78] sm:$0xf0]  ;;  %p1473_p5 = pnand %p1472_p3, %p1468_p0 }
  0x33   : > { %v1163_v29 = vor.u32 %v1269_v26, %v1162_v25 }
  0x34   : > { %578 = vmatmul.bf16.vlgmr.msra.gmra.mxu0 %v1059_v32  ;;  %618 = vmatmul.bf16.vlgmr.msra.gmra.mxu2 %v1123_v33  ;;  %v1119_v32 = vor.u32 %v1256_v30, %v1116_v31  ;;  %v1106_v33 = vld [vmem:[%s1631_s24 + $0x60] sm:$0xf] }
  0x35   : > { %v1107_v37 = vor.u32 %v1255_v34, %v1106_v33 }
  0x42   : > { %1222 = vmatmul.msk.bf16.gmra.mxu1 %vm514_vm2, %v1079_v38  ;;  %1231 = vmatmul.msk.bf16.gmra.mxu3 %vm514_vm2, %v1151_v43  ;;  %v1171_v38 = vor.u32 %v1271_v36, %v1170_v35  ;;  %v1257_v43 = vld [vmem:[%s1631_s24 + $0x74] sm:$0xf0] }
  0x43   : > { %v1115_v47 = vor.u32 %v1257_v43, %v1114_v42 }
  0x44   : > { %583 = vmatmul.bf16.gmra.mxu0 %v1067_v44  ;;  %623 = vmatmul.bf16.gmra.mxu2 %v1131_v45  ;;  %v1178_v45 = vld [vmem:[%s1631_s24 + $0xf0] sm:$0xf]  ;;  %s1052_s24 = sshll.u32 %s240_s22, 7 }
  0x45   : > { %v1179_v48 = vor.u32 %v1273_v46, %v1178_v45  ;;  %s1749_s26 = scalar_lea.vmem [#allocation2], %s1052_s24 }
  0x46   : > { %s930_s18 = sshll.u32 %s1749_s26, 4  ;;  %s931_s18 = int_to_ptr.vmem [resolvable:$true] %s930_s18 }
  0x52   : > { %1223 = vmatmul.msk.bf16.gmra.mxu1 %vm514_vm2, %v1087_v50  ;;  %1232 = vmatmul.msk.bf16.gmra.mxu3 %vm514_vm2, %v1159_v55 }
  0x54   : > { %588 = vmatmul.bf16.gmra.mxu0 %v1075_v56  ;;  %628 = vmatmul.bf16.gmra.mxu2 %v1139_v57  ;;  %v1737_v57 = vld [vmem:[%s1871_s3] ss:$0 sm:$0xff] }
  0x62   : > { %1224 = vmatmul.msk.bf16.gmra.mxu1 %vm514_vm2, %v1095_v62  ;;  %1233 = vmatmul.msk.bf16.gmra.mxu3 %vm514_vm2, %v1167_v3 }
  0x64   : > { %593 = vmatmul.bf16.gmra.mxu0 %v1083_v4  ;;  %633 = vmatmul.bf16.gmra.mxu2 %v1147_v5 }
  0x72   : > { %1225 = vmatmul.msk.bf16.gmra.mxu1 %vm514_vm2, %v1103_v10  ;;  %1234 = vmatmul.msk.bf16.gmra.mxu3 %vm514_vm2, %v1175_v15 }
  0x74   : > { %598 = vmatmul.bf16.gmra.mxu0 %v1091_v16  ;;  %638 = vmatmul.bf16.gmra.mxu2 %v1155_v17 }
  0x82   : > { %1226 = vmatmul.msk.bf16.gmra.mxu1 %vm514_vm2, %v1111_v22  ;;  %1235 = vmatmul.msk.bf16.gmra.mxu3 %vm514_vm2, %v1183_v27 }
  0x84   : > { %603 = vmatmul.bf16.gmra.mxu0 %v1099_v28  ;;  %643 = vmatmul.bf16.gmra.mxu2 %v1163_v29 }
  0x92   : > { %1227 = vmatmul.msk.bf16.gmra.mxu1 %vm514_vm2, %v1119_v32 }
  0x94   : > { %608 = vmatmul.bf16.gmra.mxu0 %v1107_v37  ;;  %648 = vmatmul.bf16.gmra.mxu2 %v1171_v38 }
  0x9f   : > { %v668_v44 = vpop.f32.mrf.mxu1 }
  0xa2   : > { %1228 = vmatmul.msk.bf16.gmra.mxu1 %vm514_vm2, %v1127_v41 }
  0xa4   : > { %613 = vmatmul.bf16.gmra.mxu0 %v1115_v47  ;;  %653 = vmatmul.bf16.gmra.mxu2 %v1179_v48 }
  0xa5   : > { %v713_v51 = vpop.f32.mrf.mxu3 }
  0xa7   : > { %v670_v49 = vpop.f32.mrf.mxu1 }
  0xad   : > { %v715_v59 = vpop.f32.mrf.mxu3 }
  0xaf   : > { %v673_v50 = vpop.f32.mrf.mxu1 }
  0xb1   : > { %v579_v52 = vpop.f32.mrf.mxu0 }
  0xb2   : > { %v669_v53 = vadd.f32 %v668_v44, %v579_v52 }
  0xb4   : > { %v752_v56 = vmul.f32 %v1731_v54, %v669_v53 }
  0xb5   : > { %v718_v7 = vpop.f32.mrf.mxu3 }
  0xb6   : > { %v788_v62 = vadd.f32 %v1737_v57, %v752_v56 }
  0xb7   : > { %v675_v55 = vpop.f32.mrf.mxu1  ;;  %v1739_v58 = vpop.f32.mrf.mxu2 }
  0xb8   : > { %v820_v2 = vmax.f32 %v788_v62, 0.0 }
  0xb9   : > { %v581_v60 = vpop.f32.mrf.mxu0 }
  0xba   : > { %v671_v61 = vadd.f32 %v670_v49, %v581_v60 }
  0xbc   : > { %v753_v63 = vmul.f32 %v1731_v54, %v671_v61 }
  0xbd   : > { %v720_v17 = vpop.f32.mrf.mxu3 }
  0xbe   : > { %v789_v0 = vadd.f32 %v1737_v57, %v753_v63 }
  0xbf   : > { %v678_v1 = vpop.f32.mrf.mxu1  ;;  %v1747_v4 = vpop.f32.mrf.mxu2 }
  0xc0   : > { %v821_v3 = vmax.f32 %v789_v0, 0.0 }
  0xc1   : > { %v584_v5 = vpop.f32.mrf.mxu0 }
  0xc2   : > { %v1287_v6 = vpack.c.bf16 %v821_v3, %v820_v2  ;;  %v674_v8 = vadd.f32 %v673_v50, %v584_v5 }
  0xc4   : > { %1288 = vst [vmem:[%s1749_s26] sm:$0xff] %v1287_v6   ;;  %v754_v10 = vmul.f32 %v1731_v54, %v674_v8 }
  0xc5   : > { %v723_v32 = vpop.f32.mrf.mxu3 }
  0xc6   : > { %v790_v15 = vadd.f32 %v1737_v57, %v754_v10 }
  0xc7   : > { %v680_v9 = vpop.f32.mrf.mxu1  ;;  %v624_v11 = vpop.f32.mrf.mxu2 }
  0xc8   : > { %v714_v14 = vadd.f32 %v713_v51, %v624_v11  ;;  %v822_v21 = vmax.f32 %v790_v15, 0.0 }
  0xc9   : > { %v586_v12 = vpop.f32.mrf.mxu0 }
  0xca   : > { %v676_v13 = vadd.f32 %v675_v55, %v586_v12  ;;  %v770_v20 = vmul.f32 %v1731_v54, %v714_v14 }
  0xcc   : > { %v755_v16 = vmul.f32 %v1731_v54, %v676_v13  ;;  %v806_v27 = vadd.f32 %v1737_v57, %v770_v20 }
  0xcd   : > { %v725_v49 = vpop.f32.mrf.mxu3 }
  0xce   : > { %v791_v18 = vadd.f32 %v1737_v57, %v755_v16  ;;  %v838_v33 = vmax.f32 %v806_v27, 0.0 }
  0xcf   : > { %v683_v19 = vpop.f32.mrf.mxu1  ;;  %v626_v23 = vpop.f32.mrf.mxu2 }
  0xd0   : > { %v823_v22 = vmax.f32 %v791_v18, 0.0  ;;  %v716_v24 = vadd.f32 %v715_v59, %v626_v23 }
  0xd1   : > { %v589_v25 = vpop.f32.mrf.mxu0 }
  0xd2   : > { %v1292_v26 = vpack.c.bf16 %v823_v22, %v822_v21  ;;  %v771_v28 = vmul.f32 %v1731_v54, %v716_v24  ;;  %v679_v29 = vadd.f32 %v678_v1, %v589_v25 }
  0xd4   : > { %1364 = vst [vmem:[%s1749_s26 + $0x8] sm:$0xff] %v1292_v26   ;;  %v807_v30 = vadd.f32 %v1737_v57, %v771_v28  ;;  %v756_v35 = vmul.f32 %v1731_v54, %v679_v29 }
  0xd5   : > { %v728_v5 = vpop.f32.mrf.mxu3 }
  0xd6   : > { %v839_v34 = vmax.f32 %v807_v30, 0.0  ;;  %v792_v41 = vadd.f32 %v1737_v57, %v756_v35 }
  0xd7   : > { %v685_v31 = vpop.f32.mrf.mxu1  ;;  %v629_v36 = vpop.f32.mrf.mxu2 }
  0xd8   : > { %v1332_v37 = vpack.c.bf16 %v839_v34, %v838_v33  ;;  %v719_v40 = vadd.f32 %v718_v7, %v629_v36  ;;  %v824_v46 = vmax.f32 %v792_v41, 0.0 }
  0xd9   : > { %v591_v38 = vpop.f32.mrf.mxu0 }
  0xda   : > { %v681_v39 = vadd.f32 %v680_v9, %v591_v38  ;;  %1372 = vst [vmem:[%s1749_s26 + $0x48] sm:$0xff] %v1332_v37   ;;  %v772_v45 = vmul.f32 %v1731_v54, %v719_v40 }
  0xdc   : > { %v757_v42 = vmul.f32 %v1731_v54, %v681_v39  ;;  %v808_v53 = vadd.f32 %v1737_v57, %v772_v45 }
  0xdd   : > { %v730_v21 = vpop.f32.mrf.mxu3 }
  0xde   : > { %v793_v43 = vadd.f32 %v1737_v57, %v757_v42  ;;  %v840_v61 = vmax.f32 %v808_v53, 0.0 }
  0xdf   : > { %v688_v44 = vpop.f32.mrf.mxu1  ;;  %v631_v48 = vpop.f32.mrf.mxu2 }
  0xe0   : > { %v825_v47 = vmax.f32 %v793_v43, 0.0  ;;  %v721_v50 = vadd.f32 %v720_v17, %v631_v48 }
  0xe1   : > { %v594_v51 = vpop.f32.mrf.mxu0 }
  0xe2   : > { %v1297_v52 = vpack.c.bf16 %v825_v47, %v824_v46  ;;  %v773_v55 = vmul.f32 %v1731_v54, %v721_v50  ;;  %v684_v56 = vadd.f32 %v683_v19, %v594_v51 }
  0xe4   : > { %1365 = vst [vmem:[%s1749_s26 + $0x10] sm:$0xff] %v1297_v52   ;;  %v809_v59 = vadd.f32 %v1737_v57, %v773_v55  ;;  %v758_v63 = vmul.f32 %v1731_v54, %v684_v56 }
  0xe5   : > { %v733_v36 = vpop.f32.mrf.mxu3 }
  0xe6   : > { %v841_v62 = vmax.f32 %v809_v59, 0.0  ;;  %v794_v7 = vadd.f32 %v1737_v57, %v758_v63 }
  0xe7   : > { %v690_v60 = vpop.f32.mrf.mxu1  ;;  %v634_v0 = vpop.f32.mrf.mxu2 }
  0xe8   : > { %v1337_v1 = vpack.c.bf16 %v841_v62, %v840_v61  ;;  %v724_v6 = vadd.f32 %v723_v32, %v634_v0  ;;  %v826_v12 = vmax.f32 %v794_v7, 0.0 }
  0xe9   : > { %v596_v2 = vpop.f32.mrf.mxu0 }
  0xea   : > { %v686_v3 = vadd.f32 %v685_v31, %v596_v2  ;;  %1373 = vst [vmem:[%s1749_s26 + $0x50] sm:$0xff] %v1337_v1   ;;  %v774_v11 = vmul.f32 %v1731_v54, %v724_v6 }
  0xec   : > { %v759_v8 = vmul.f32 %v1731_v54, %v686_v3  ;;  %v810_v18 = vadd.f32 %v1737_v57, %v774_v11 }
  0xed   : > { %v735_v53 = vpop.f32.mrf.mxu3 }
  0xee   : > { %v795_v9 = vadd.f32 %v1737_v57, %v759_v8  ;;  %v842_v24 = vmax.f32 %v810_v18, 0.0 }
  0xef   : > { %v693_v10 = vpop.f32.mrf.mxu1  ;;  %v636_v14 = vpop.f32.mrf.mxu2 }
  0xf0   : > { %v827_v13 = vmax.f32 %v795_v9, 0.0  ;;  %v726_v15 = vadd.f32 %v725_v49, %v636_v14 }
  0xf1   : > { %v599_v16 = vpop.f32.mrf.mxu0 }
  0xf2   : > { %v1302_v17 = vpack.c.bf16 %v827_v13, %v826_v12  ;;  %v775_v19 = vmul.f32 %v1731_v54, %v726_v15  ;;  %v689_v20 = vadd.f32 %v688_v44, %v599_v16 }
  0xf4   : > { %1366 = vst [vmem:[%s1749_s26 + $0x18] sm:$0xff] %v1302_v17   ;;  %v811_v22 = vadd.f32 %v1737_v57, %v775_v19  ;;  %v760_v26 = vmul.f32 %v1731_v54, %v689_v20 }
  0xf5   : > { %v738_v9 = vpop.f32.mrf.mxu3 }
  0xf6   : > { %v843_v25 = vmax.f32 %v811_v22, 0.0  ;;  %v796_v32 = vadd.f32 %v1737_v57, %v760_v26 }
  0xf7   : > { %v695_v23 = vpop.f32.mrf.mxu1  ;;  %v639_v27 = vpop.f32.mrf.mxu2 }
  0xf8   : > { %v1342_v28 = vpack.c.bf16 %v843_v25, %v842_v24  ;;  %v729_v31 = vadd.f32 %v728_v5, %v639_v27  ;;  %v828_v38 = vmax.f32 %v796_v32, 0.0 }
  0xf9   : > { %v601_v29 = vpop.f32.mrf.mxu0 }
  0xfa   : > { %v691_v30 = vadd.f32 %v690_v60, %v601_v29  ;;  %1374 = vst [vmem:[%s1749_s26 + $0x58] sm:$0xff] %v1342_v28   ;;  %v776_v37 = vmul.f32 %v1731_v54, %v729_v31 }
  0xfc   : > { %v761_v33 = vmul.f32 %v1731_v54, %v691_v30  ;;  %v812_v44 = vadd.f32 %v1737_v57, %v776_v37 }
  0xfd   : > { %v740_v24 = vpop.f32.mrf.mxu3 }
  0xfe   : > { %v797_v34 = vadd.f32 %v1737_v57, %v761_v33  ;;  %v844_v49 = vmax.f32 %v812_v44, 0.0 }
  0xff   : > { %v698_v35 = vpop.f32.mrf.mxu1  ;;  %v641_v40 = vpop.f32.mrf.mxu2 }
 0x100   : > { %v829_v39 = vmax.f32 %v797_v34, 0.0  ;;  %v731_v41 = vadd.f32 %v730_v21, %v641_v40 }
 0x101   : > { %v604_v42 = vpop.f32.mrf.mxu0 }
 0x102   : > { %v1307_v43 = vpack.c.bf16 %v829_v39, %v828_v38  ;;  %v777_v45 = vmul.f32 %v1731_v54, %v731_v41  ;;  %v694_v46 = vadd.f32 %v693_v10, %v604_v42 }
 0x104   : > { %1367 = vst [vmem:[%s1749_s26 + $0x20] sm:$0xff] %v1307_v43   ;;  %v813_v47 = vadd.f32 %v1737_v57, %v777_v45  ;;  %v762_v51 = vmul.f32 %v1731_v54, %v694_v46 }
 0x105   : > { %v743_v41 = vpop.f32.mrf.mxu3 }
 0x106   : > { %v845_v50 = vmax.f32 %v813_v47, 0.0  ;;  %v798_v61 = vadd.f32 %v1737_v57, %v762_v51 }
 0x107   : > { %v700_v48 = vpop.f32.mrf.mxu1  ;;  %v644_v52 = vpop.f32.mrf.mxu2 }
 0x108   : > { %v1347_v55 = vpack.c.bf16 %v845_v50, %v844_v49  ;;  %v734_v60 = vadd.f32 %v733_v36, %v644_v52  ;;  %v830_v2 = vmax.f32 %v798_v61, 0.0 }
 0x109   : > { %v606_v56 = vpop.f32.mrf.mxu0 }
 0x10a   : > { %v696_v59 = vadd.f32 %v695_v23, %v606_v56  ;;  %1375 = vst [vmem:[%s1749_s26 + $0x60] sm:$0xff] %v1347_v55   ;;  %v778_v1 = vmul.f32 %v1731_v54, %v734_v60 }
 0x10c   : > { %v763_v62 = vmul.f32 %v1731_v54, %v696_v59  ;;  %v814_v10 = vadd.f32 %v1737_v57, %v778_v1 }
 0x10e   : > { %v799_v63 = vadd.f32 %v1737_v57, %v763_v62  ;;  %v846_v15 = vmax.f32 %v814_v10, 0.0 }
 0x10f   : > { %v703_v0 = vpop.f32.mrf.mxu1  ;;  %v646_v5 = vpop.f32.mrf.mxu2 }
 0x110   : > { %v831_v3 = vmax.f32 %v799_v63, 0.0  ;;  %v736_v6 = vadd.f32 %v735_v53, %v646_v5 }
 0x111   : > { %v609_v7 = vpop.f32.mrf.mxu0 }
 0x112   : > { %v1312_v8 = vpack.c.bf16 %v831_v3, %v830_v2  ;;  %v779_v11 = vmul.f32 %v1731_v54, %v736_v6  ;;  %v699_v12 = vadd.f32 %v698_v35, %v609_v7 }
 0x114   : > { %1368 = vst [vmem:[%s1749_s26 + $0x28] sm:$0xff] %v1312_v8   ;;  %v815_v13 = vadd.f32 %v1737_v57, %v779_v11  ;;  %v764_v17 = vmul.f32 %v1731_v54, %v699_v12 }
 0x116   : > { %v847_v16 = vmax.f32 %v815_v13, 0.0  ;;  %v800_v23 = vadd.f32 %v1737_v57, %v764_v17 }
 0x117   : > { %v705_v14 = vpop.f32.mrf.mxu1  ;;  %v649_v18 = vpop.f32.mrf.mxu2 }
 0x118   : > { %v1352_v19 = vpack.c.bf16 %v847_v16, %v846_v15  ;;  %v739_v22 = vadd.f32 %v738_v9, %v649_v18  ;;  %v832_v29 = vmax.f32 %v800_v23, 0.0 }
 0x119   : > { %v611_v20 = vpop.f32.mrf.mxu0 }
 0x11a   : > { %v701_v21 = vadd.f32 %v700_v48, %v611_v20  ;;  %1376 = vst [vmem:[%s1749_s26 + $0x68] sm:$0xff] %v1352_v19   ;;  %v780_v28 = vmul.f32 %v1731_v54, %v739_v22 }
 0x11c   : > { %v765_v25 = vmul.f32 %v1731_v54, %v701_v21  ;;  %v816_v36 = vadd.f32 %v1737_v57, %v780_v28 }
 0x11e   : > { %v801_v26 = vadd.f32 %v1737_v57, %v765_v25  ;;  %v848_v43 = vmax.f32 %v816_v36, 0.0 }
 0x11f   : > { %v708_v27 = vpop.f32.mrf.mxu1  ;;  %v651_v31 = vpop.f32.mrf.mxu2 }
 0x120   : > { %v833_v30 = vmax.f32 %v801_v26, 0.0  ;;  %v709_v32 = vadd.f32 %v708_v27, %v1739_v58  ;;  %v741_v33 = vadd.f32 %v740_v24, %v651_v31 }
 0x121   : > { %v614_v34 = vpop.f32.mrf.mxu0 }
 0x122   : > { %v1317_v35 = vpack.c.bf16 %v833_v30, %v832_v29  ;;  %v781_v37 = vmul.f32 %v1731_v54, %v741_v33  ;;  %v704_v38 = vadd.f32 %v703_v0, %v614_v34  ;;  %v768_v39 = vmul.f32 %v1731_v54, %v709_v32  ;;  %v745_v0 = vpop.f32.mrf.mxu3 }
 0x124   : > { %1369 = vst [vmem:[%s1749_s26 + $0x30] sm:$0xff] %v1317_v35   ;;  %v817_v40 = vadd.f32 %v1737_v57, %v781_v37  ;;  %v766_v45 = vmul.f32 %v1731_v54, %v704_v38  ;;  %v804_v47 = vadd.f32 %v1737_v57, %v768_v39 }
 0x126   : > { %v849_v44 = vmax.f32 %v817_v40, 0.0  ;;  %v802_v55 = vadd.f32 %v1737_v57, %v766_v45  ;;  %v836_v56 = vmax.f32 %v804_v47, 0.0 }
 0x127   : > { %v710_v42 = vpop.f32.mrf.mxu1  ;;  %v654_v46 = vpop.f32.mrf.mxu2 }
 0x128   : > { %v711_v58 = vadd.f32 %v710_v42, %v1747_v4  ;;  %v1357_v48 = vpack.c.bf16 %v849_v44, %v848_v43  ;;  %v744_v53 = vadd.f32 %v743_v41, %v654_v46  ;;  %v834_v63 = vmax.f32 %v802_v55, 0.0 }
 0x129   : > { %v616_v50 = vpop.f32.mrf.mxu0 }
 0x12a   : > { %v769_v49 = vmul.f32 %v1731_v54, %v711_v58  ;;  %v706_v51 = vadd.f32 %v705_v14, %v616_v50  ;;  %1377 = vst [vmem:[%s1749_s26 + $0x70] sm:$0xff] %v1357_v48   ;;  %v782_v62 = vmul.f32 %v1731_v54, %v744_v53 }
 0x12c   : > { %v805_v52 = vadd.f32 %v1737_v57, %v769_v49  ;;  %v767_v4 = vmul.f32 %v1731_v54, %v706_v51  ;;  %v818_v6 = vadd.f32 %v1737_v57, %v782_v62 }
 0x12e   : > { %v837_v59 = vmax.f32 %v805_v52, 0.0  ;;  %v803_v60 = vadd.f32 %v1737_v57, %v767_v4  ;;  %v850_v9 = vmax.f32 %v818_v6, 0.0 }
 0x12f   : > { %v656_v2 = vpop.f32.mrf.mxu2 }
 0x130   : > { %v1327_v61 = vpack.c.bf16 %v837_v59, %v836_v56  ;;  %v835_v1 = vmax.f32 %v803_v60, 0.0  ;;  %v746_v3 = vadd.f32 %v745_v0, %v656_v2 }
 0x132   : > { %1371 = vst [vmem:[%s1749_s26 + $0x40] sm:$0xff] %v1327_v61   ;;  %v1322_v5 = vpack.c.bf16 %v835_v1, %v834_v63  ;;  %v783_v7 = vmul.f32 %v1731_v54, %v746_v3 }
 0x134   : > { %1370 = vst [vmem:[%s1749_s26 + $0x38] sm:$0xff] %v1322_v5   ;;  %v819_v8 = vadd.f32 %v1737_v57, %v783_v7 }
 0x136   : > { %v851_v10 = vmax.f32 %v819_v8, 0.0 }
 0x138   : > { %v1362_v11 = vpack.c.bf16 %v851_v10, %v850_v9 }
 0x13a   : > { %1378 = vst [vmem:[%s1749_s26 + $0x78] sm:$0xff] %v1362_v11  }
 0x13b   : > { %1476 = shalt.err (!%p1473_p5)
}
 0x13c   : > { %s1530_s22 = smov 64   ;;  %s1531_s24 = smov 4  }
 0x13d   : > { %1389 = dma.vmem_to_hbm [thread:$0]  (%p1597_p4), %s931_s18, 2048, %s933_s7, %s917_s8, %s1530_s22, %s1530_s22, %s1531_s24  }
 0x13e PF: > { %p1395_p6 = scmp.ge.s32.totalorder %s1527_s20, 2  ;;  %s947_s26 = sand.u32 1, %s1507_s15  }
 0x13f   : > { %s948_s29 = scalar_lea.sflag [#allocation3], %s947_s26 }
 0x140   : > { %p1392_p7 = pnand %p1395_p6, %p1604_p8 }
 0x142   : > { %p1393_p9 = pneg %p1392_p7 }
 0x144   : > { %1502 = dma.done.wait (%p1393_p9), %s948_s29, 2048  }
 0x145   : > { %1504 = vsyncadd (%p1393_p9), %s948_s29, 4294965248  ;;  %s17_s20 = sadd.s32 1, %s1527_s20   ;;  %s1875_s15 = smov %s1511_s16 }
 0x146   : > { %p14_p10 = scmp.ge.s32.totalorder %s17_s20, 4   ;;  %s1876_s16 = smov %s1515_s17 }
 0x147   : > { %s1877_s17 = smov %s1610_s28  ;;  %s1878_s18 = smov %s1523_s19 }
 0x148   : > { %s1879_s19 = smov %s1881_s23  ;;  %16 = sbr.rel (!%p14_p10) target bundleno = 4 (0x4), region = 80 }
 0x14d   :  { %954 = vsyncpa [#allocation3], 1 }
 0x14e   :  { %956 = vsyncpa [#allocation3 + $0x1], 1 }

</bundles_post_ra>
